<compile_context>
chip_gen: v7x
topology: tpu7x:2x2x1
jax: 0.10.0
libtpu: 0.0.40
codegen_flags: <defaults>
</compile_context>

<pallas_src>
import functools

import jax
import jax.numpy as jnp
from jax.experimental import pallas as pl
from jax.experimental.pallas import tpu as pltpu


# ----------------------------------------------------------------------------
# Fused kernel: [GraphConv x n_conv] -> SumPooling -> Linear -> ReLU -> Linear
# One grid step handles a block of BT graphs; everything stays in VMEM.
# ----------------------------------------------------------------------------
def fused_gcn_kernel(a_ref, h_ref, *refs, n_conv):
    # refs = [w0, b0, w1, b1, ..., lin1_w, lin1_b, lin2_w, lin2_b, o_ref]
    conv_refs = refs[: 2 * n_conv]
    lin1_w_ref, lin1_b_ref, lin2_w_ref, lin2_b_ref, o_ref = refs[2 * n_conv:]

    bt, n, _ = a_ref.shape
    a = a_ref[...].astype(jnp.bfloat16)           # (BT, N, N) adjacency, bf16 for MXU
    h = h_ref[...].astype(jnp.float32)            # (BT, N, Fin) running features, f32

    def adj_matmul(adj_b16, x_b16):
        # adj: (BT,N,N) bf16, x: (BT,N,F) bf16 -> (BT,N,F) f32 (MXU, f32 accumulate)
        if bt == 1:
            return jnp.dot(adj_b16[0], x_b16[0],
                           preferred_element_type=jnp.float32)[None]
        return jnp.einsum("bij,bjf->bif", adj_b16, x_b16,
                          preferred_element_type=jnp.float32)

    for li in range(n_conv):
        w_ref = conv_refs[2 * li]
        b_ref = conv_refs[2 * li + 1]
        fin, fout = w_ref.shape
        w = w_ref[...].astype(jnp.bfloat16)
        hb = h.astype(jnp.bfloat16)
        if fin < fout:
            # (A @ h) @ W : adjacency matmul over the narrower feature dim.
            ah = adj_matmul(a, hb).astype(jnp.bfloat16)             # (BT, N, Fin)
            z = jnp.dot(ah.reshape(bt * n, fin), w,                 # shared-W matmul
                        preferred_element_type=jnp.float32)         # over BT*N rows
            z = z.reshape(bt, n, fout)
        else:
            # A @ (h @ W) : batch the shared-W matmul over all BT*N rows.
            hw = jnp.dot(hb.reshape(bt * n, fin), w,
                         preferred_element_type=jnp.float32)
            z = adj_matmul(a, hw.reshape(bt, n, fout).astype(jnp.bfloat16))
        z = z + b_ref[...]                                          # f32 epilogue
        if li != n_conv - 1:                                        # last conv: no act
            z = jnp.maximum(z, 0.0)
        # dropout between layers is identity in eval mode
        h = z

    # SumPooling over nodes, then the Linear -> ReLU -> Linear head.
    pooled = jnp.sum(h, axis=1)                                     # (BT, H) f32
    z = jnp.dot(pooled.astype(jnp.bfloat16),
                lin1_w_ref[...].astype(jnp.bfloat16),
                preferred_element_type=jnp.float32) + lin1_b_ref[...]
    z = jnp.maximum(z, 0.0)
    y = jnp.dot(z.astype(jnp.bfloat16),
                lin2_w_ref[...].astype(jnp.bfloat16),
                preferred_element_type=jnp.float32) + lin2_b_ref[...]
    o_ref[...] = y[:, None, :].astype(o_ref.dtype)                  # (BT, 1, R)


def gcn_forward(params, a_norm, h, *, graphs_per_block=1):
    """Fused forward pass. a_norm: (B,N,N) normalized adjacency, h: (B,N,Fin)."""
    B, N, Fin = h.shape
    conv = params["conv"]
    n_conv = len(conv)
    H = params["lin1_w"].shape[0]
    R = params["lin2_w"].shape[1]
    BT = graphs_per_block
    assert B % BT == 0, "batch must be divisible by graphs_per_block"

    in_specs = [
        pl.BlockSpec((BT, N, N), lambda i: (i, 0, 0)),     # A_hat (per graph block)
        pl.BlockSpec((BT, N, Fin), lambda i: (i, 0, 0)),   # h0    (per graph block)
    ]
    args = [a_norm, h]
    for w, b in conv:                                      # batch-shared weights
        fin, fout = w.shape
        in_specs.append(pl.BlockSpec((fin, fout), lambda i: (0, 0)))
        in_specs.append(pl.BlockSpec((1, fout), lambda i: (0, 0)))
        args.extend([w, b])
    in_specs.extend([
        pl.BlockSpec((H, H), lambda i: (0, 0)),
        pl.BlockSpec((1, H), lambda i: (0, 0)),
        pl.BlockSpec((H, R), lambda i: (0, 0)),
        pl.BlockSpec((1, R), lambda i: (0, 0)),
    ])
    args.extend([params["lin1_w"], params["lin1_b"],
                 params["lin2_w"], params["lin2_b"]])

    out3 = pl.pallas_call(
        functools.partial(fused_gcn_kernel, n_conv=n_conv),
        out_shape=jax.ShapeDtypeStruct((B, 1, R), h.dtype),
        grid_spec=pltpu.PrefetchScalarGridSpec(
            num_scalar_prefetch=0,
            grid=(B // BT,),
            in_specs=in_specs,
            # 3-D output so the block's last two dims equal the full array dims
            # and the 128-wide head output stays lane-dense (unmasked stores).
            out_specs=pl.BlockSpec((BT, 1, R), lambda i: (i, 0, 0)),
        ),
        compiler_params=pltpu.CompilerParams(
            dimension_semantics=("parallel",),   # v7x: shard graph blocks across TCs
        ),
    )(*args)
    return out3[:, 0, :]                                   # (B, R)


# ----------------------------------------------------------------------------
# Parameter / input setup + pure-JAX reference (plain-JAX glue)
# ----------------------------------------------------------------------------
def init_gcn_params(key, flen, n_hidden, intermediate_rep, n_layers):
    params = {"conv": []}
    dims = [flen] + [n_hidden] * (n_layers + 1)   # n_layers + 1 GraphConv layers
    for li in range(n_layers + 1):
        key, kw = jax.random.split(key)
        fin, fout = dims[li], dims[li + 1]
        w = jax.random.normal(kw, (fin, fout), jnp.float32) / jnp.sqrt(float(fin))
        b = jnp.zeros((1, fout), jnp.float32)
        params["conv"].append((w, b))
    key, k1, k2 = jax.random.split(key, 3)
    params["lin1_w"] = jax.random.normal(k1, (n_hidden, n_hidden), jnp.float32) / jnp.sqrt(float(n_hidden))
    params["lin1_b"] = jnp.zeros((1, n_hidden), jnp.float32)
    params["lin2_w"] = jax.random.normal(k2, (n_hidden, intermediate_rep), jnp.float32) / jnp.sqrt(float(n_hidden))
    params["lin2_b"] = jnp.zeros((1, intermediate_rep), jnp.float32)
    return params


def build_normalized_adjacency(key, B, N):
    # random symmetric adjacency with self-loops, D^-1/2 (A+I) D^-1/2 normalization
    a = (jax.random.uniform(key, (B, N, N)) < 0.3).astype(jnp.float32)
    a = jnp.maximum(a, jnp.transpose(a, (0, 2, 1)))               # symmetrize
    a = jnp.maximum(a, jnp.eye(N, dtype=jnp.float32)[None])       # self-loops
    deg = jnp.sum(a, axis=-1)                                     # (B, N)
    inv_sqrt = 1.0 / jnp.sqrt(jnp.maximum(deg, 1.0))
    return a * inv_sqrt[:, :, None] * inv_sqrt[:, None, :]


def gcn_reference(params, a_norm, h):
    # f32 pure-JAX reference of the same forward pass.
    n_conv = len(params["conv"])
    for i, (w, b) in enumerate(params["conv"]):
        h = jnp.einsum("bij,bjf->bif", a_norm, h @ w) + b
        if i != n_conv - 1:
            h = jnp.maximum(h, 0.0)
    pooled = jnp.sum(h, axis=1)
    z = jnp.maximum(pooled @ params["lin1_w"] + params["lin1_b"], 0.0)
    return z @ params["lin2_w"] + params["lin2_b"]


if __name__ == "__main__":
    # small shapes consistent with the module structure
    B, N = 2, 16                 # 2 graphs, 16 nodes each
    flen = 16                    # input feature length
    n_hidden = 128
    intermediate_rep = 128       # module default; keeps the head output lane-dense
    n_layers = 3                 # -> 4 GraphConv layers total

    key = jax.random.PRNGKey(0)
    key, k_adj, k_feat, k_par = jax.random.split(key, 4)

    a_norm = build_normalized_adjacency(k_adj, B, N)              # (B, N, N)
    h0 = jax.random.normal(k_feat, (B, N, flen), jnp.float32)     # (B, N, flen)
    params = init_gcn_params(k_par, flen, n_hidden, intermediate_rep, n_layers)

    out = gcn_forward(params, a_norm, h0)                         # (B, intermediate_rep)
    jax.block_until_ready(out)
    assert out.shape == (B, intermediate_rep)

    # sanity check against the f32 reference (bf16 matmul inputs, f32 accumulate)
    ref = gcn_reference(params, a_norm, h0)
    rel_err = float(jnp.max(jnp.abs(out - ref)) / (jnp.max(jnp.abs(ref)) + 1e-6))
    assert jnp.all(jnp.isfinite(out)) and rel_err < 0.1, f"mismatch vs reference: {rel_err}"

    print("KERNEL_OK")
</pallas_src>

<mosaic_0001>
module attributes {stable_mosaic.version = 11 : i64} {
  func.func @fused_gcn_kernel(%arg0: i32, %arg1: memref<1x16x16xf32, #tpu.memory_space<vmem>>, %arg2: memref<1x16x16xf32, #tpu.memory_space<vmem>>, %arg3: memref<16x128xf32, #tpu.memory_space<vmem>>, %arg4: memref<1x128xf32, #tpu.memory_space<vmem>>, %arg5: memref<128x128xf32, #tpu.memory_space<vmem>>, %arg6: memref<1x128xf32, #tpu.memory_space<vmem>>, %arg7: memref<128x128xf32, #tpu.memory_space<vmem>>, %arg8: memref<1x128xf32, #tpu.memory_space<vmem>>, %arg9: memref<128x128xf32, #tpu.memory_space<vmem>>, %arg10: memref<1x128xf32, #tpu.memory_space<vmem>>, %arg11: memref<128x128xf32, #tpu.memory_space<vmem>>, %arg12: memref<1x128xf32, #tpu.memory_space<vmem>>, %arg13: memref<128x128xf32, #tpu.memory_space<vmem>>, %arg14: memref<1x128xf32, #tpu.memory_space<vmem>>, %arg15: memref<1x1x128xf32, #tpu.memory_space<vmem>>) attributes {dimension_semantics = [#tpu.dimension_semantics<parallel>], iteration_bounds = array<i64: 2>, scalar_prefetch = 0 : i64, scratch_operands = 0 : i64, tpu.core_type = #tpu.core_type<tc>, window_params = [{transform_indices = @transform_0, window_bounds = array<i64: 1, 16, 16>}, {transform_indices = @transform_1, window_bounds = array<i64: 1, 16, 16>}, {pipeline_mode = #tpu.pipeline_mode<synchronous>, transform_indices = @transform_2, window_bounds = array<i64: 16, 128>}, {pipeline_mode = #tpu.pipeline_mode<synchronous>, transform_indices = @transform_3, window_bounds = array<i64: 1, 128>}, {pipeline_mode = #tpu.pipeline_mode<synchronous>, transform_indices = @transform_4, window_bounds = array<i64: 128, 128>}, {pipeline_mode = #tpu.pipeline_mode<synchronous>, transform_indices = @transform_5, window_bounds = array<i64: 1, 128>}, {pipeline_mode = #tpu.pipeline_mode<synchronous>, transform_indices = @transform_6, window_bounds = array<i64: 128, 128>}, {pipeline_mode = #tpu.pipeline_mode<synchronous>, transform_indices = @transform_7, window_bounds = array<i64: 1, 128>}, {pipeline_mode = #tpu.pipeline_mode<synchronous>, transform_indices = @transform_8, window_bounds = array<i64: 128, 128>}, {pipeline_mode = #tpu.pipeline_mode<synchronous>, transform_indices = @transform_9, window_bounds = array<i64: 1, 128>}, {pipeline_mode = #tpu.pipeline_mode<synchronous>, transform_indices = @transform_10, window_bounds = array<i64: 128, 128>}, {pipeline_mode = #tpu.pipeline_mode<synchronous>, transform_indices = @transform_11, window_bounds = array<i64: 1, 128>}, {pipeline_mode = #tpu.pipeline_mode<synchronous>, transform_indices = @transform_12, window_bounds = array<i64: 128, 128>}, {pipeline_mode = #tpu.pipeline_mode<synchronous>, transform_indices = @transform_13, window_bounds = array<i64: 1, 128>}, {transform_indices = @transform_14, window_bounds = array<i64: 1, 1, 128>}]} {
    %c0 = arith.constant 0 : index
    %c0_0 = arith.constant 0 : index
    %c0_1 = arith.constant 0 : index
    %0 = vector.load %arg1[%c0, %c0_0, %c0_1] : memref<1x16x16xf32, #tpu.memory_space<vmem>>, vector<1x16x16xf32>
    %1 = arith.truncf %0 : vector<1x16x16xf32> to vector<1x16x16xbf16>
    %c0_2 = arith.constant 0 : index
    %c0_3 = arith.constant 0 : index
    %c0_4 = arith.constant 0 : index
    %2 = vector.load %arg2[%c0_2, %c0_3, %c0_4] : memref<1x16x16xf32, #tpu.memory_space<vmem>>, vector<1x16x16xf32>
    %c0_5 = arith.constant 0 : index
    %c0_6 = arith.constant 0 : index
    %3 = vector.load %arg3[%c0_5, %c0_6] : memref<16x128xf32, #tpu.memory_space<vmem>>, vector<16x128xf32>
    %4 = arith.truncf %3 : vector<16x128xf32> to vector<16x128xbf16>
    %5 = arith.truncf %2 : vector<1x16x16xf32> to vector<1x16x16xbf16>
    %6 = vector.shape_cast %1 : vector<1x16x16xbf16> to vector<16x16xbf16>
    %7 = vector.shape_cast %5 : vector<1x16x16xbf16> to vector<16x16xbf16>
    %cst = arith.constant dense<0.000000e+00> : vector<16x16xf32>
    %8 = tpu.matmul %6, %7, %cst {dimension_numbers = #tpu.dot_dimension_numbers<[1], [0], [0], [1], [0, 0, 1, 1], [], []>} : vector<16x16xbf16>, vector<16x16xbf16>, vector<16x16xf32> -> vector<16x16xf32>
    %9 = vector.shape_cast %8 : vector<16x16xf32> to vector<1x16x16xf32>
    %10 = arith.truncf %9 : vector<1x16x16xf32> to vector<1x16x16xbf16>
    %11 = vector.shape_cast %10 : vector<1x16x16xbf16> to vector<16x16xbf16>
    %cst_7 = arith.constant dense<0.000000e+00> : vector<16x128xf32>
    %12 = tpu.matmul %11, %4, %cst_7 {dimension_numbers = #tpu.dot_dimension_numbers<[1], [0], [0], [1], [0, 0, 1, 1], [], []>} : vector<16x16xbf16>, vector<16x128xbf16>, vector<16x128xf32> -> vector<16x128xf32>
    %13 = vector.shape_cast %12 : vector<16x128xf32> to vector<1x16x128xf32>
    %c0_8 = arith.constant 0 : index
    %c0_9 = arith.constant 0 : index
    %14 = vector.load %arg4[%c0_8, %c0_9] : memref<1x128xf32, #tpu.memory_space<vmem>>, vector<1x128xf32>
    %15 = vector.shape_cast %14 : vector<1x128xf32> to vector<1x1x128xf32>
    %16 = vector.broadcast %15 : vector<1x1x128xf32> to vector<1x16x128xf32>
    %17 = arith.addf %13, %16 : vector<1x16x128xf32>
    %cst_10 = arith.constant 0.000000e+00 : f32
    %18 = vector.broadcast %cst_10 : f32 to vector<1x16x128xf32>
    %19 = arith.maximumf %17, %18 : vector<1x16x128xf32>
    %c0_11 = arith.constant 0 : index
    %c0_12 = arith.constant 0 : index
    %20 = vector.load %arg5[%c0_11, %c0_12] : memref<128x128xf32, #tpu.memory_space<vmem>>, vector<128x128xf32>
    %21 = arith.truncf %20 : vector<128x128xf32> to vector<128x128xbf16>
    %22 = arith.truncf %19 : vector<1x16x128xf32> to vector<1x16x128xbf16>
    %23 = vector.shape_cast %22 : vector<1x16x128xbf16> to vector<16x128xbf16>
    %cst_13 = arith.constant dense<0.000000e+00> : vector<16x128xf32>
    %24 = tpu.matmul %23, %21, %cst_13 {dimension_numbers = #tpu.dot_dimension_numbers<[1], [0], [0], [1], [0, 0, 1, 1], [], []>} : vector<16x128xbf16>, vector<128x128xbf16>, vector<16x128xf32> -> vector<16x128xf32>
    %25 = vector.shape_cast %24 : vector<16x128xf32> to vector<1x16x128xf32>
    %26 = arith.truncf %25 : vector<1x16x128xf32> to vector<1x16x128xbf16>
    %27 = vector.shape_cast %1 : vector<1x16x16xbf16> to vector<16x16xbf16>
    %28 = vector.shape_cast %26 : vector<1x16x128xbf16> to vector<16x128xbf16>
    %cst_14 = arith.constant dense<0.000000e+00> : vector<16x128xf32>
    %29 = tpu.matmul %27, %28, %cst_14 {dimension_numbers = #tpu.dot_dimension_numbers<[1], [0], [0], [1], [0, 0, 1, 1], [], []>} : vector<16x16xbf16>, vector<16x128xbf16>, vector<16x128xf32> -> vector<16x128xf32>
    %30 = vector.shape_cast %29 : vector<16x128xf32> to vector<1x16x128xf32>
    %c0_15 = arith.constant 0 : index
    %c0_16 = arith.constant 0 : index
    %31 = vector.load %arg6[%c0_15, %c0_16] : memref<1x128xf32, #tpu.memory_space<vmem>>, vector<1x128xf32>
    %32 = vector.shape_cast %31 : vector<1x128xf32> to vector<1x1x128xf32>
    %33 = vector.broadcast %32 : vector<1x1x128xf32> to vector<1x16x128xf32>
    %34 = arith.addf %30, %33 : vector<1x16x128xf32>
    %cst_17 = arith.constant 0.000000e+00 : f32
    %35 = vector.broadcast %cst_17 : f32 to vector<1x16x128xf32>
    %36 = arith.maximumf %34, %35 : vector<1x16x128xf32>
    %c0_18 = arith.constant 0 : index
    %c0_19 = arith.constant 0 : index
    %37 = vector.load %arg7[%c0_18, %c0_19] : memref<128x128xf32, #tpu.memory_space<vmem>>, vector<128x128xf32>
    %38 = arith.truncf %37 : vector<128x128xf32> to vector<128x128xbf16>
    %39 = arith.truncf %36 : vector<1x16x128xf32> to vector<1x16x128xbf16>
    %40 = vector.shape_cast %39 : vector<1x16x128xbf16> to vector<16x128xbf16>
    %cst_20 = arith.constant dense<0.000000e+00> : vector<16x128xf32>
    %41 = tpu.matmul %40, %38, %cst_20 {dimension_numbers = #tpu.dot_dimension_numbers<[1], [0], [0], [1], [0, 0, 1, 1], [], []>} : vector<16x128xbf16>, vector<128x128xbf16>, vector<16x128xf32> -> vector<16x128xf32>
    %42 = vector.shape_cast %41 : vector<16x128xf32> to vector<1x16x128xf32>
    %43 = arith.truncf %42 : vector<1x16x128xf32> to vector<1x16x128xbf16>
    %44 = vector.shape_cast %1 : vector<1x16x16xbf16> to vector<16x16xbf16>
    %45 = vector.shape_cast %43 : vector<1x16x128xbf16> to vector<16x128xbf16>
    %cst_21 = arith.constant dense<0.000000e+00> : vector<16x128xf32>
    %46 = tpu.matmul %44, %45, %cst_21 {dimension_numbers = #tpu.dot_dimension_numbers<[1], [0], [0], [1], [0, 0, 1, 1], [], []>} : vector<16x16xbf16>, vector<16x128xbf16>, vector<16x128xf32> -> vector<16x128xf32>
    %47 = vector.shape_cast %46 : vector<16x128xf32> to vector<1x16x128xf32>
    %c0_22 = arith.constant 0 : index
    %c0_23 = arith.constant 0 : index
    %48 = vector.load %arg8[%c0_22, %c0_23] : memref<1x128xf32, #tpu.memory_space<vmem>>, vector<1x128xf32>
    %49 = vector.shape_cast %48 : vector<1x128xf32> to vector<1x1x128xf32>
    %50 = vector.broadcast %49 : vector<1x1x128xf32> to vector<1x16x128xf32>
    %51 = arith.addf %47, %50 : vector<1x16x128xf32>
    %cst_24 = arith.constant 0.000000e+00 : f32
    %52 = vector.broadcast %cst_24 : f32 to vector<1x16x128xf32>
    %53 = arith.maximumf %51, %52 : vector<1x16x128xf32>
    %c0_25 = arith.constant 0 : index
    %c0_26 = arith.constant 0 : index
    %54 = vector.load %arg9[%c0_25, %c0_26] : memref<128x128xf32, #tpu.memory_space<vmem>>, vector<128x128xf32>
    %55 = arith.truncf %54 : vector<128x128xf32> to vector<128x128xbf16>
    %56 = arith.truncf %53 : vector<1x16x128xf32> to vector<1x16x128xbf16>
    %57 = vector.shape_cast %56 : vector<1x16x128xbf16> to vector<16x128xbf16>
    %cst_27 = arith.constant dense<0.000000e+00> : vector<16x128xf32>
    %58 = tpu.matmul %57, %55, %cst_27 {dimension_numbers = #tpu.dot_dimension_numbers<[1], [0], [0], [1], [0, 0, 1, 1], [], []>} : vector<16x128xbf16>, vector<128x128xbf16>, vector<16x128xf32> -> vector<16x128xf32>
    %59 = vector.shape_cast %58 : vector<16x128xf32> to vector<1x16x128xf32>
    %60 = arith.truncf %59 : vector<1x16x128xf32> to vector<1x16x128xbf16>
    %61 = vector.shape_cast %1 : vector<1x16x16xbf16> to vector<16x16xbf16>
    %62 = vector.shape_cast %60 : vector<1x16x128xbf16> to vector<16x128xbf16>
    %cst_28 = arith.constant dense<0.000000e+00> : vector<16x128xf32>
    %63 = tpu.matmul %61, %62, %cst_28 {dimension_numbers = #tpu.dot_dimension_numbers<[1], [0], [0], [1], [0, 0, 1, 1], [], []>} : vector<16x16xbf16>, vector<16x128xbf16>, vector<16x128xf32> -> vector<16x128xf32>
    %64 = vector.shape_cast %63 : vector<16x128xf32> to vector<1x16x128xf32>
    %c0_29 = arith.constant 0 : index
    %c0_30 = arith.constant 0 : index
    %65 = vector.load %arg10[%c0_29, %c0_30] : memref<1x128xf32, #tpu.memory_space<vmem>>, vector<1x128xf32>
    %66 = vector.shape_cast %65 : vector<1x128xf32> to vector<1x1x128xf32>
    %67 = vector.broadcast %66 : vector<1x1x128xf32> to vector<1x16x128xf32>
    %68 = arith.addf %64, %67 : vector<1x16x128xf32>
    %cst_31 = arith.constant dense<0.000000e+00> : vector<1x128xf32>
    %69 = vector.multi_reduction <add>, %68, %cst_31 [1] : vector<1x16x128xf32> to vector<1x128xf32>
    %70 = arith.truncf %69 : vector<1x128xf32> to vector<1x128xbf16>
    %c0_32 = arith.constant 0 : index
    %c0_33 = arith.constant 0 : index
    %71 = vector.load %arg11[%c0_32, %c0_33] : memref<128x128xf32, #tpu.memory_space<vmem>>, vector<128x128xf32>
    %72 = arith.truncf %71 : vector<128x128xf32> to vector<128x128xbf16>
    %cst_34 = arith.constant dense<0.000000e+00> : vector<1x128xf32>
    %73 = tpu.matmul %70, %72, %cst_34 {dimension_numbers = #tpu.dot_dimension_numbers<[1], [0], [0], [1], [0, 0, 1, 1], [], []>} : vector<1x128xbf16>, vector<128x128xbf16>, vector<1x128xf32> -> vector<1x128xf32>
    %c0_35 = arith.constant 0 : index
    %c0_36 = arith.constant 0 : index
    %74 = vector.load %arg12[%c0_35, %c0_36] : memref<1x128xf32, #tpu.memory_space<vmem>>, vector<1x128xf32>
    %75 = arith.addf %73, %74 : vector<1x128xf32>
    %cst_37 = arith.constant 0.000000e+00 : f32
    %76 = vector.broadcast %cst_37 : f32 to vector<1x128xf32>
    %77 = arith.maximumf %75, %76 : vector<1x128xf32>
    %78 = arith.truncf %77 : vector<1x128xf32> to vector<1x128xbf16>
    %c0_38 = arith.constant 0 : index
    %c0_39 = arith.constant 0 : index
    %79 = vector.load %arg13[%c0_38, %c0_39] : memref<128x128xf32, #tpu.memory_space<vmem>>, vector<128x128xf32>
    %80 = arith.truncf %79 : vector<128x128xf32> to vector<128x128xbf16>
    %cst_40 = arith.constant dense<0.000000e+00> : vector<1x128xf32>
    %81 = tpu.matmul %78, %80, %cst_40 {dimension_numbers = #tpu.dot_dimension_numbers<[1], [0], [0], [1], [0, 0, 1, 1], [], []>} : vector<1x128xbf16>, vector<128x128xbf16>, vector<1x128xf32> -> vector<1x128xf32>
    %c0_41 = arith.constant 0 : index
    %c0_42 = arith.constant 0 : index
    %82 = vector.load %arg14[%c0_41, %c0_42] : memref<1x128xf32, #tpu.memory_space<vmem>>, vector<1x128xf32>
    %83 = arith.addf %81, %82 : vector<1x128xf32>
    %84 = vector.shape_cast %83 : vector<1x128xf32> to vector<1x1x128xf32>
    %c0_43 = arith.constant 0 : index
    %c0_44 = arith.constant 0 : index
    %c0_45 = arith.constant 0 : index
    %85 = vector.load %arg15[%c0_43, %c0_44, %c0_45] : memref<1x1x128xf32, #tpu.memory_space<vmem>>, vector<1x1x128xf32>
    tpu.vector_store %arg15[%c0_43, %c0_44, %c0_45], %84 {strides = array<i32>} : memref<1x1x128xf32, #tpu.memory_space<vmem>>, vector<1x1x128xf32>,
    return
  }
  func.func @transform_0(%arg0: i32) -> (i32, i32, i32) {
    %c0_i32 = arith.constant 0 : i32
    %c0_i32_0 = arith.constant 0 : i32
    %c0_i32_1 = arith.constant 0 : i32
    return %arg0, %c0_i32, %c0_i32_0 : i32, i32, i32
  }
  func.func @transform_1(%arg0: i32) -> (i32, i32, i32) {
    %c0_i32 = arith.constant 0 : i32
    %c0_i32_0 = arith.constant 0 : i32
    %c0_i32_1 = arith.constant 0 : i32
    return %arg0, %c0_i32, %c0_i32_0 : i32, i32, i32
  }
  func.func @transform_2(%arg0: i32) -> (i32, i32) {
    %c0_i32 = arith.constant 0 : i32
    %c0_i32_0 = arith.constant 0 : i32
    %c0_i32_1 = arith.constant 0 : i32
    return %c0_i32, %c0_i32_0 : i32, i32
  }
  func.func @transform_3(%arg0: i32) -> (i32, i32) {
    %c0_i32 = arith.constant 0 : i32
    %c0_i32_0 = arith.constant 0 : i32
    %c0_i32_1 = arith.constant 0 : i32
    return %c0_i32, %c0_i32_0 : i32, i32
  }
  func.func @transform_4(%arg0: i32) -> (i32, i32) {
    %c0_i32 = arith.constant 0 : i32
    %c0_i32_0 = arith.constant 0 : i32
    %c0_i32_1 = arith.constant 0 : i32
    return %c0_i32, %c0_i32_0 : i32, i32
  }
  func.func @transform_5(%arg0: i32) -> (i32, i32) {
    %c0_i32 = arith.constant 0 : i32
    %c0_i32_0 = arith.constant 0 : i32
    %c0_i32_1 = arith.constant 0 : i32
    return %c0_i32, %c0_i32_0 : i32, i32
  }
  func.func @transform_6(%arg0: i32) -> (i32, i32) {
    %c0_i32 = arith.constant 0 : i32
    %c0_i32_0 = arith.constant 0 : i32
    %c0_i32_1 = arith.constant 0 : i32
    return %c0_i32, %c0_i32_0 : i32, i32
  }
  func.func @transform_7(%arg0: i32) -> (i32, i32) {
    %c0_i32 = arith.constant 0 : i32
    %c0_i32_0 = arith.constant 0 : i32
    %c0_i32_1 = arith.constant 0 : i32
    return %c0_i32, %c0_i32_0 : i32, i32
  }
  func.func @transform_8(%arg0: i32) -> (i32, i32) {
    %c0_i32 = arith.constant 0 : i32
    %c0_i32_0 = arith.constant 0 : i32
    %c0_i32_1 = arith.constant 0 : i32
    return %c0_i32, %c0_i32_0 : i32, i32
  }
  func.func @transform_9(%arg0: i32) -> (i32, i32) {
    %c0_i32 = arith.constant 0 : i32
    %c0_i32_0 = arith.constant 0 : i32
    %c0_i32_1 = arith.constant 0 : i32
    return %c0_i32, %c0_i32_0 : i32, i32
  }
  func.func @transform_10(%arg0: i32) -> (i32, i32) {
    %c0_i32 = arith.constant 0 : i32
    %c0_i32_0 = arith.constant 0 : i32
    %c0_i32_1 = arith.constant 0 : i32
    return %c0_i32, %c0_i32_0 : i32, i32
  }
  func.func @transform_11(%arg0: i32) -> (i32, i32) {
    %c0_i32 = arith.constant 0 : i32
    %c0_i32_0 = arith.constant 0 : i32
    %c0_i32_1 = arith.constant 0 : i32
    return %c0_i32, %c0_i32_0 : i32, i32
  }
  func.func @transform_12(%arg0: i32) -> (i32, i32) {
    %c0_i32 = arith.constant 0 : i32
    %c0_i32_0 = arith.constant 0 : i32
    %c0_i32_1 = arith.constant 0 : i32
    return %c0_i32, %c0_i32_0 : i32, i32
  }
  func.func @transform_13(%arg0: i32) -> (i32, i32) {
    %c0_i32 = arith.constant 0 : i32
    %c0_i32_0 = arith.constant 0 : i32
    %c0_i32_1 = arith.constant 0 : i32
    return %c0_i32, %c0_i32_0 : i32, i32
  }
  func.func @transform_14(%arg0: i32) -> (i32, i32, i32) {
    %c0_i32 = arith.constant 0 : i32
    %c0_i32_0 = arith.constant 0 : i32
    %c0_i32_1 = arith.constant 0 : i32
    return %arg0, %c0_i32, %c0_i32_0 : i32, i32, i32
  }
}

</mosaic_0001>

<bundles_post_ra>
// kernel: tpu_custom_call.1
= control target key start
LH: loop header
LB: loop body
LE: loop exit
PB: predicated region body
PF: predicated region fallthrough
CT: control target
= control target key end

     0   :  { %s2609_s0 = inlined_call_operand.hbm [shape: f32[2,16,16], index: 0, kind: input, shape index: {}]   ;;  %s2610_s1 = inlined_call_operand.hbm [shape: f32[2,16,16], index: 1, kind: input, shape index: {}]   ;;  %s2611_s2 = inlined_call_operand.hbm [shape: f32[16,128], index: 2, kind: input, shape index: {}]   ;;  %s2612_s3 = inlined_call_operand.vmem [shape: f32[1,128], index: 3, kind: input, shape index: {}]   ;;  %s2613_s4 = inlined_call_operand.hbm [shape: f32[128,128], index: 4, kind: input, shape index: {}]   ;;  %s2614_s5 = inlined_call_operand.vmem [shape: f32[1,128], index: 5, kind: input, shape index: {}]   ;;  %s2615_s6 = inlined_call_operand.hbm [shape: f32[128,128], index: 6, kind: input, shape index: {}]   ;;  %s2616_s7 = inlined_call_operand.vmem [shape: f32[1,128], index: 7, kind: input, shape index: {}]   ;;  %s2617_s8 = inlined_call_operand.hbm [shape: f32[128,128], index: 8, kind: input, shape index: {}]   ;;  %s2618_s9 = inlined_call_operand.vmem [shape: f32[1,128], index: 9, kind: input, shape index: {}]   ;;  %s2619_s10 = inlined_call_operand.hbm [shape: f32[128,128], index: 10, kind: input, shape index: {}]   ;;  %s2620_s11 = inlined_call_operand.vmem [shape: f32[1,128], index: 11, kind: input, shape index: {}]   ;;  %s2621_s12 = inlined_call_operand.hbm [shape: f32[128,128], index: 12, kind: input, shape index: {}]   ;;  %s2622_s13 = inlined_call_operand.vmem [shape: f32[1,128], index: 13, kind: input, shape index: {}]   ;;  %s2623_s14 = inlined_call_operand.hbm [shape: f32[2,1,128], index: 14, kind: output, shape index: {}]  }
   0x1   :  { %2632 = sst [smem:[#allocation24_spill]] %s2609_s0 }
   0x2   :  { %2633 = sst [smem:[#allocation25_spill]] %s2611_s2 }
   0x3   :  { %2634 = sst [smem:[#allocation26_spill]] %s2613_s4 }
   0x4   :  { %2635 = sst [smem:[#allocation27_spill]] %s2614_s5 }
   0x5   :  { %2636 = sst [smem:[#allocation28_spill]] %s2615_s6 }
   0x6   :  { %2637 = sst [smem:[#allocation29_spill]] %s2616_s7 }
   0x7   :  { %2638 = sst [smem:[#allocation30_spill]] %s2617_s8 }
   0x8   :  { %2639 = sst [smem:[#allocation31_spill]] %s2618_s9 }
   0x9   :  { %2640 = sst [smem:[#allocation32_spill]] %s2620_s11 }
   0xa   :  { %2641 = sst [smem:[#allocation33_spill]] %s2622_s13 }
   0xb   :  { %2642 = sst [smem:[#allocation34_spill]] %s2623_s14 }
   0xc   :  { %19 = vsyncpa [#allocation3], 0 }
   0xd   :  { %21 = vsyncpa [#allocation3 + $0x1], 0 }
   0xe   :  { %22 = vsyncpa [#allocation6], 0 }
   0xf   :  { %24 = vsyncpa [#allocation6 + $0x1], 0 }
  0x10   :  { %25 = vsyncpa [#allocation9], 0 }
  0x11   :  { %26 = vsyncpa [#allocation12], 0 }
  0x12   :  { %27 = vsyncpa [#allocation15], 0 }
  0x13   :  { %28 = vsyncpa [#allocation4], 0 }
  0x14   :  { %30 = vsyncpa [#allocation4 + $0x1], 0  ;;  %s2121_s29 = smov 0   ;;  %s2123_s30 = smov 0  }
  0x15   :  { %s2125_s15 = smov 0   ;;  %s2127_s16 = smov 0  }
  0x16 LB: > { %s2033_s17 = smov [#allocation7]   ;;  %s2142_s19 = sadd.s32 4294967295, %s2031_s16   ;;  %s2031_s16 = sphi %s2127_s16, %s2680_s16   ;;  %s2027_s15 = sphi %s2125_s15, %s2679_s15   ;;  %s2023_s30 = sphi %s2123_s30, %s2678_s30   ;;  %s2019_s29 = sphi %s2121_s29, %s2677_s29  }
  0x17   : > { %s383_s18 = sshll.u32 %s2033_s17, 4  ;;  %p1379_p0 = scmp.ge.s32.totalorder %s2031_s16, 1  ;;  %s2147_s18 = int_to_ptr.vmem [resolvable:$true] %s383_s18 }
  0x18   : > { %p2625_p1 = scmp.eq.s32.totalorder %s2142_s19, 0  ;;  %p371_p2 = scmp.lt.s32.totalorder %s2031_s16, 3 }
  0x19   : > { %s2034_s21 = smov [#allocation8]   ;;  %s2035_s24 = smov [#allocation11]  }
  0x1a   : > { %p2149_p3 = pnand %p1379_p0, %p371_p2  ;;  %s399_s22 = sshll.u32 %s2034_s21, 4  ;;  %s2162_s22 = int_to_ptr.vmem [resolvable:$true] %s399_s22 }
  0x1b   : > { %s431_s25 = sshll.u32 %s2035_s24, 4  ;;  %s2645_s2 = sld [smem:[#allocation25_spill]]  ;;  %s2164_s25 = int_to_ptr.vmem [resolvable:$true] %s431_s25 }
  0x1c   : > { %s2643_s20 = scalar_select %p2149_p3, 1, 0 }
  0x1d   : > { %p1631_p5 = pneg %p2149_p3 }
  0x1f   : > { %p2158_p6 = pnand %p1631_p5, %p2625_p1 }
  0x21   : > { %s1717_s28 = scalar_lea.hbm %s2645_s2, 256  ;;  %p2174_p8 = pneg %p2158_p6 }
  0x22   : > { %p1718_p7 = scmp.ne.s32.totalorder %s2645_s2, %s1717_s28  ;;  %p1724_p11 = scmp.lt.u32.totalorder %s1717_s28, %s2645_s2 }
  0x24   : > { %p1720_p9 = pnand %p2174_p8, %p1718_p7 }
  0x26   : > { %p1721_p10 = pneg %p1720_p9 }
  0x28   : > { %p1726_p12 = pnand %p1724_p11, %p1721_p10 }
  0x2a   : > { %1729 = shalt.err (!%p1726_p12)
}
  0x2b   : > { %s1730_s14 = scalar_lea.vmem %s2147_s18, 256  ;;  %p1738_p5 = scmp.lt.s32.totalorder %s2147_s18, %s2147_s18 }
  0x2c   : > { %p1731_p13 = scmp.ne.s32.totalorder %s2147_s18, %s1730_s14  ;;  %p1739_p4 = scmp.lt.s32.totalorder %s1730_s14, %s1730_s14 }
  0x2e   : > { %p1733_p0 = pnand %p1731_p13, %p2174_p8  ;;  %p1740_p7 = por %p1739_p4, %p1738_p5 }
  0x30   : > { %p1734_p2 = pneg %p1733_p0 }
  0x32   : > { %p1741_p9 = pnand %p1740_p7, %p1734_p2 }
  0x34   : > { %1744 = shalt.err (!%p1741_p9)
}
  0x35   : > { %s2627_s26 = smov 128   ;;  %s2629_s13 = smov 8  }
  0x36   : > { %1634 = dma.hbm_to_vmem [thread:$0]  (!%p2158_p6), %s2645_s2, 256, %s2147_s18, [#allocation6], %s2627_s26, %s2627_s26, %s2629_s13  }
  0x37   : > { %s2647_s4 = sld [smem:[#allocation26_spill]] }
  0x3d   : > { %s1745_s14 = scalar_lea.hbm %s2647_s4, 2048 }
  0x3e   : > { %p1746_p4 = scmp.ne.s32.totalorder %s2647_s4, %s1745_s14  ;;  %p1752_p12 = scmp.lt.u32.totalorder %s1745_s14, %s2647_s4 }
  0x40   : > { %p1748_p10 = pnand %p1746_p4, %p2174_p8 }
  0x42   : > { %p1749_p11 = pneg %p1748_p10 }
  0x44   : > { %p1754_p13 = pnand %p1752_p12, %p1749_p11 }
  0x46   : > { %1757 = shalt.err (!%p1754_p13)
}
  0x47   : > { %s1758_s18 = scalar_lea.vmem %s2162_s22, 2048  ;;  %p1766_p7 = scmp.lt.s32.totalorder %s2162_s22, %s2162_s22 }
  0x48   : > { %p1759_p0 = scmp.ne.s32.totalorder %s2162_s22, %s1758_s18  ;;  %p1767_p9 = scmp.lt.s32.totalorder %s1758_s18, %s1758_s18 }
  0x4a   : > { %p1761_p2 = pnand %p1759_p0, %p2174_p8  ;;  %p1768_p4 = por %p1767_p9, %p1766_p7 }
  0x4c   : > { %p1762_p5 = pneg %p1761_p2 }
  0x4e   : > { %p1769_p10 = pnand %p1768_p4, %p1762_p5 }
  0x50   : > { %1772 = shalt.err (!%p1769_p10)
}
  0x51   : > { %1637 = dma.hbm_to_vmem [thread:$0]  (!%p2158_p6), %s2647_s4, 2048, %s2162_s22, [#allocation9], %s2627_s26, %s2627_s26, %s2629_s13  }
  0x52   : > { %s2648_s8 = sld [smem:[#allocation30_spill]] }
  0x58   : > { %s1773_s27 = scalar_lea.hbm %s2648_s8, 2048 }
  0x59   : > { %p1774_p11 = scmp.ne.s32.totalorder %s2648_s8, %s1773_s27  ;;  %p1780_p0 = scmp.lt.u32.totalorder %s1773_s27, %s2648_s8 }
  0x5b   : > { %p1776_p12 = pnand %p1774_p11, %p2174_p8 }
  0x5d   : > { %p1777_p13 = pneg %p1776_p12 }
  0x5f   : > { %p1782_p2 = pnand %p1780_p0, %p1777_p13 }
  0x61   : > { %1785 = shalt.err (!%p1782_p2)
}
  0x62   : > { %s1786_s22 = scalar_lea.vmem %s2164_s25, 2048  ;;  %p1794_p4 = scmp.lt.s32.totalorder %s2164_s25, %s2164_s25 }
  0x63   : > { %p1787_p5 = scmp.ne.s32.totalorder %s2164_s25, %s1786_s22  ;;  %p1795_p10 = scmp.lt.s32.totalorder %s1786_s22, %s1786_s22 }
  0x65   : > { %p1789_p7 = pnand %p1787_p5, %p2174_p8  ;;  %p1796_p11 = por %p1795_p10, %p1794_p4 }
  0x67   : > { %p1790_p9 = pneg %p1789_p7 }
  0x69   : > { %p1797_p12 = pnand %p1796_p11, %p1790_p9 }
  0x6b   : > { %1800 = shalt.err (!%p1797_p12)
}
  0x6c   : > { %1643 = dma.hbm_to_vmem [thread:$0]  (!%p2158_p6), %s2648_s8, 2048, %s2164_s25, [#allocation12], %s2627_s26, %s2627_s26, %s2629_s13  }
  0x6d   : > { %s2038_s7 = smov [#allocation10]   ;;  %s2039_s11 = smov [#allocation13]  }
  0x6e   : > { %s415_s9 = sshll.u32 %s2038_s7, 4  ;;  %s447_s27 = sshll.u32 %s2039_s11, 4  ;;  %s416_s9 = int_to_ptr.vmem [resolvable:$true] %s415_s9  ;;  %s448_s27 = int_to_ptr.vmem [resolvable:$true] %s447_s27 }
  0x6f   : > { %s2649_s6 = sld [smem:[#allocation28_spill]] }
  0x75   : > { %s1801_s24 = scalar_lea.hbm %s2649_s6, 2048 }
  0x76   : > { %p1802_p13 = scmp.ne.s32.totalorder %s2649_s6, %s1801_s24  ;;  %p1808_p5 = scmp.lt.u32.totalorder %s1801_s24, %s2649_s6 }
  0x78   : > { %p1804_p0 = pnand %p1802_p13, %p2174_p8 }
  0x7a   : > { %p1805_p2 = pneg %p1804_p0 }
  0x7c   : > { %p1810_p7 = pnand %p1808_p5, %p1805_p2 }
  0x7e   : > { %1813 = shalt.err (!%p1810_p7)
}
  0x7f   : > { %s1814_s25 = scalar_lea.vmem %s416_s9, 2048  ;;  %p1822_p11 = scmp.lt.s32.totalorder %s416_s9, %s416_s9 }
  0x80   : > { %p1815_p9 = scmp.ne.s32.totalorder %s416_s9, %s1814_s25  ;;  %p1823_p12 = scmp.lt.s32.totalorder %s1814_s25, %s1814_s25 }
  0x82   : > { %p1817_p4 = pnand %p1815_p9, %p2174_p8  ;;  %p1824_p1 = por %p1823_p12, %p1822_p11 }
  0x84   : > { %p1818_p10 = pneg %p1817_p4 }
  0x86   : > { %p1825_p3 = pnand %p1824_p1, %p1818_p10 }
  0x88   : > { %1828 = shalt.err (!%p1825_p3)
}
  0x89   : > { %1640 = dma.hbm_to_vmem [thread:$0]  (!%p2158_p6), %s2649_s6, 2048, %s416_s9, [#allocation9], %s2627_s26, %s2627_s26, %s2629_s13  }
  0x8a   : > { %s1829_s28 = scalar_lea.hbm %s2619_s10, 2048 }
  0x8b   : > { %p1830_p1 = scmp.ne.s32.totalorder %s2619_s10, %s1829_s28  ;;  %p1836_p0 = scmp.lt.u32.totalorder %s1829_s28, %s2619_s10 }
  0x8d   : > { %p1832_p3 = pnand %p1830_p1, %p2174_p8 }
  0x8f   : > { %p1833_p13 = pneg %p1832_p3 }
  0x91   : > { %p1838_p2 = pnand %p1836_p0, %p1833_p13 }
  0x93   : > { %1841 = shalt.err (!%p1838_p2)
}
  0x94   : > { %s1842_s18 = scalar_lea.vmem %s448_s27, 2048  ;;  %p1850_p4 = scmp.lt.s32.totalorder %s448_s27, %s448_s27 }
  0x95   : > { %p1843_p5 = scmp.ne.s32.totalorder %s448_s27, %s1842_s18  ;;  %p1851_p10 = scmp.lt.s32.totalorder %s1842_s18, %s1842_s18 }
  0x97   : > { %p1845_p7 = pnand %p1843_p5, %p2174_p8  ;;  %p1852_p11 = por %p1851_p10, %p1850_p4 }
  0x99   : > { %p1846_p9 = pneg %p1845_p7 }
  0x9b   : > { %p1853_p12 = pnand %p1852_p11, %p1846_p9 }
  0x9d   : > { %1856 = shalt.err (!%p1853_p12)
}
  0x9e   : > { %1646 = dma.hbm_to_vmem [thread:$0]  (!%p2158_p6), %s2619_s10, 2048, %s448_s27, [#allocation12], %s2627_s26, %s2627_s26, %s2629_s13  }
  0x9f   : > { %s2040_s2 = smov [#allocation14]   ;;  %s1857_s28 = scalar_lea.hbm %s2621_s12, 2048 }
  0xa0   : > { %s463_s5 = sshll.u32 %s2040_s2, 4  ;;  %p1858_p1 = scmp.ne.s32.totalorder %s2621_s12, %s1857_s28  ;;  %s464_s5 = int_to_ptr.vmem [resolvable:$true] %s463_s5 }
  0xa1   : > { %p1864_p0 = scmp.lt.u32.totalorder %s1857_s28, %s2621_s12 }
  0xa2   : > { %p1860_p3 = pnand %p1858_p1, %p2174_p8 }
  0xa4   : > { %p1861_p13 = pneg %p1860_p3 }
  0xa6   : > { %p1866_p2 = pnand %p1864_p0, %p1861_p13 }
  0xa8   : > { %1869 = shalt.err (!%p1866_p2)
}
  0xa9   : > { %s1870_s27 = scalar_lea.vmem %s464_s5, 2048  ;;  %p1878_p4 = scmp.lt.s32.totalorder %s464_s5, %s464_s5 }
  0xaa   : > { %p1871_p5 = scmp.ne.s32.totalorder %s464_s5, %s1870_s27  ;;  %p1879_p10 = scmp.lt.s32.totalorder %s1870_s27, %s1870_s27 }
  0xac   : > { %p1873_p7 = pnand %p1871_p5, %p2174_p8  ;;  %p1880_p11 = por %p1879_p10, %p1878_p4 }
  0xae   : > { %p1874_p9 = pneg %p1873_p7 }
  0xb0   : > { %p1881_p12 = pnand %p1880_p11, %p1874_p9 }
  0xb2   : > { %1884 = shalt.err (!%p1881_p12)
}
  0xb3   : > { %1649 = dma.hbm_to_vmem [thread:$0]  (!%p2158_p6), %s2621_s12, 2048, %s464_s5, [#allocation15], %s2627_s26, %s2627_s26, %s2629_s13  }
  0xb4   : > { %s1378_s23 = sadd.s32 4294967294, %s2031_s16   ;;  %s2315_s21 = sadd.s32 1, %s2031_s16  }
  0xb5   : > { %s40_s25 = ssub.s32 %s2031_s16, %s2315_s21  ;;  %s43_s2 = sadd.s32 1, %s2027_s15 }
  0xb6   : > { %p41_p8 = scmp.eq.s32.totalorder %s40_s25, 0  ;;  %p50_p1 = scmp.ne.s32.totalorder %s2027_s15, %s2023_s30 }
  0xb7   : > { %p51_p3 = scmp.eq.s32.totalorder %s2031_s16, 0  ;;  %p56_p13 = scmp.ne.s32.totalorder %s2023_s30, %s2019_s29 }
  0xb8   : > { %s2326_s7 = scalar_select %p41_p8, %s2027_s15, %s43_s2  }
  0xb9   : > { %p2328_p0 = por %p51_p3, %p50_p1  ;;  %p2651_p2 = scmp.eq.s32.totalorder %s2142_s19, 0 }
  0xba   : > { %p358_p5 = scmp.eq.s32.totalorder %s2142_s19, 1  ;;  %p364_p7 = scmp.eq.s32.totalorder %s1378_s23, 1 }
  0xbb   : > { %p2334_p6 = por %p2651_p2, %p56_p13  ;;  %p1667_p9 = scmp.lt.s32.totalorder %s2031_s16, 2 }
  0xbc   : > { %s480_s28 = sand.u32 1, %s2027_s15   ;;  %p2341_p4 = por %p358_p5, %p50_p1 }
  0xbd   : > { %p2345_p10 = por %p364_p7, %p56_p13  ;;  %s1387_s14 = sshll.u32 %s480_s28, 4 }
  0xbe   : > { %s2653_s17 = scalar_select %p2341_p4, 1, 0 }
  0xbf   : > { %s2654_s24 = scalar_select %p2345_p10, 1, 0 }
  0xc0   : > { %s1414_s22 = sshll.u32 %s2031_s16, 8  ;;  %s2655_s0 = sld [smem:[#allocation24_spill]] }
  0xc1   : > { %s484_s23 = scalar_lea.vmem [#allocation2], %s1387_s14  ;;  %p2359_p11 = pnand %p1667_p9, %p2328_p0 }
  0xc2   : > { %s491_s25 = sshll.u32 %s484_s23, 4  ;;  %s2366_s27 = scalar_lea.hbm %s2610_s1, %s1414_s22  ;;  %s2355_s25 = int_to_ptr.vmem [resolvable:$true] %s491_s25 }
  0xc3   : > { %s505_s18 = scalar_lea.vmem [#allocation5], %s1387_s14  ;;  %s2370_s6 = scalar_lea.sflag [#allocation3], %s480_s28 }
  0xc4   : > { %s2368_s4 = sshll.u32 %s505_s18, 4  ;;  %p1887_p8 = pneg %p2359_p11  ;;  %s2402_s4 = int_to_ptr.vmem [resolvable:$true] %s2368_s4 }
  0xc6   : > { %s2353_s9 = scalar_lea.hbm %s2655_s0, %s1414_s22  ;;  %s1890_s26 = scalar_lea.hbm %s2655_s0, 512 }
  0xc7   : > { %s1885_s23 = scalar_lea.hbm %s2353_s9, 256  ;;  %p1891_p13 = scmp.lt.u32.totalorder %s2353_s9, %s2655_s0 }
  0xc8   : > { %p1886_p12 = scmp.ne.s32.totalorder %s2353_s9, %s1885_s23  ;;  %p1892_p0 = scmp.lt.u32.totalorder %s1890_s26, %s1885_s23 }
  0xc9   : > { %p1894_p5 = scmp.lt.u32.totalorder %s1885_s23, %s2353_s9 }
  0xca   : > { %p1888_p1 = pnand %p1887_p8, %p1886_p12  ;;  %p1893_p2 = por %p1892_p0, %p1891_p13 }
  0xcc   : > { %p1889_p3 = pneg %p1888_p1  ;;  %p1895_p7 = por %p1894_p5, %p1893_p2 }
  0xce   : > { %p1896_p9 = pnand %p1895_p7, %p1889_p3 }
  0xd0   : > { %1899 = shalt.err (!%p1896_p9)
}
  0xd1   : > { %s1900_s28 = scalar_lea.vmem %s2355_s25, 256  ;;  %s2041_s8 = smov [#allocation2]  }
  0xd2   : > { %p1901_p12 = scmp.ne.s32.totalorder %s2355_s25, %s1900_s28  ;;  %s1905_s14 = sshll.u32 %s2041_s8, 4  ;;  %s1906_s14 = int_to_ptr.vmem [resolvable:$false] %s1905_s14 }
  0xd3   : > { %s1907_s18 = scalar_lea.vmem %s1906_s14, 512  ;;  %p1908_p4 = scmp.lt.s32.totalorder %s2355_s25, %s1906_s14 }
  0xd4   : > { %p1903_p1 = pnand %p1901_p12, %p1887_p8  ;;  %p1909_p13 = scmp.lt.s32.totalorder %s1907_s18, %s1900_s28 }
  0xd6   : > { %p1904_p10 = pneg %p1903_p1  ;;  %p1910_p0 = por %p1909_p13, %p1908_p4 }
  0xd8   : > { %p1911_p2 = pnand %p1910_p0, %p1904_p10 }
  0xda   : > { %1914 = shalt.err (!%p1911_p2)
}
  0xdb   : > { %s2657_s23 = smov 8   ;;  %s2658_s11 = smov 128  }
  0xdc   : > { %1653 = dma.hbm_to_vmem [thread:$0]  (!%p2359_p11), %s2353_s9, 256, %s2355_s25, %s2370_s6, %s2658_s11, %s2658_s11, %s2657_s23  }
  0xdd   : > { %s501_s26 = sand.u32 1, %s2031_s16   ;;  %s1915_s22 = scalar_lea.hbm %s2366_s27, 256 }
  0xde   : > { %s2405_s13 = scalar_lea.sflag [#allocation6], %s501_s26  ;;  %p1916_p4 = scmp.ne.s32.totalorder %s2366_s27, %s1915_s22 }
  0xdf   : > { %s1920_s14 = scalar_lea.hbm %s2610_s1, 512  ;;  %p1921_p5 = scmp.lt.u32.totalorder %s2366_s27, %s2610_s1 }
  0xe0   : > { %p1918_p10 = pnand %p1916_p4, %p1887_p8  ;;  %p1922_p7 = scmp.lt.u32.totalorder %s1920_s14, %s1915_s22 }
  0xe1   : > { %p1924_p12 = scmp.lt.u32.totalorder %s1915_s22, %s2366_s27 }
  0xe2   : > { %p1919_p3 = pneg %p1918_p10  ;;  %p1923_p9 = por %p1922_p7, %p1921_p5 }
  0xe4   : > { %p1925_p1 = por %p1924_p12, %p1923_p9 }
  0xe6   : > { %p1926_p13 = pnand %p1925_p1, %p1919_p3 }
  0xe8   : > { %1929 = shalt.err (!%p1926_p13)
}
  0xe9   : > { %s1930_s6 = scalar_lea.vmem %s2402_s4, 256  ;;  %s2042_s9 = smov [#allocation5]  }
  0xea   : > { %p1931_p0 = scmp.ne.s32.totalorder %s2402_s4, %s1930_s6  ;;  %s1935_s25 = sshll.u32 %s2042_s9, 4  ;;  %s1936_s25 = int_to_ptr.vmem [resolvable:$false] %s1935_s25 }
  0xeb   : > { %s1937_s0 = scalar_lea.vmem %s1936_s25, 512  ;;  %p1938_p10 = scmp.lt.s32.totalorder %s2402_s4, %s1936_s25 }
  0xec   : > { %p1933_p2 = pnand %p1931_p0, %p1887_p8  ;;  %p1939_p5 = scmp.lt.s32.totalorder %s1937_s0, %s1930_s6 }
  0xee   : > { %p1934_p4 = pneg %p1933_p2  ;;  %p1940_p7 = por %p1939_p5, %p1938_p10 }
  0xf0   : > { %p1941_p9 = pnand %p1940_p7, %p1934_p4 }
  0xf2   : > { %1944 = shalt.err (!%p1941_p9)
}
  0xf3   : > { %1656 = dma.hbm_to_vmem [thread:$0]  (!%p2359_p11), %s2366_s27, 256, %s2402_s4, %s2405_s13, %s2658_s11, %s2658_s11, %s2657_s23  }
  0xf4   : > { %p2659_p8 = scmp.ne.s32.totalorder %s2643_s20, 0 }
  0xf5   : > { %s2437_s26 = sand.u32 (!%p2659_p8), 1, %s2023_s30  }
  0xf6   : > { %524 = sbr.rel (%p2659_p8) target bundleno = 2487 (0x9b7), region = 76  ;;  %s1394_s22 = sshll.u32 (!%p2659_p8), %s2437_s26, 4 }
  0xf7   : > { %s527_s28 = scalar_lea.sflag (!%p2659_p8), [#allocation3], %s2437_s26  ;;  %s530_s8 = scalar_lea.vmem (!%p2659_p8), [#allocation2], %s1394_s22 }
  0xfd   : > { %1990 = dma.done.wait (%p2334_p6), %s527_s28, 256  }
  0xfe   : > { %1992 = vsyncadd (%p2334_p6), %s527_s28, 4294967040  ;;  %s535_s4 = sand.u32 1, %s2142_s19   ;;  %s539_s20 = scalar_lea.vmem [#allocation5], %s1394_s22 }
  0xff   : > { %s536_s2 = scalar_lea.sflag [#allocation6], %s535_s4 }
 0x100   : > { %1994 = dma.done.wait (%p2334_p6), %s536_s2, 256  }
 0x101   : > { %1996 = vsyncadd (%p2334_p6), %s536_s2, 4294967040  ;;  %p2660_p11 = scmp.eq.s32.totalorder %s2142_s19, 0 }
 0x103   : > { %1998 = dma.done.wait (%p2660_p11), [#allocation6], 256   ;;  %p2661_p3 = pmov %p2660_p11 }
 0x105   : > { %2000 = vsyncadd (%p2661_p3), [#allocation6], 4294967040  ;;  %p2662_p12 = pmov %p2661_p3 }
 0x106   : > { %p2663_p1 = pmov %p2661_p3 }
 0x107   : > { %2002 = dma.done.wait (%p2662_p12), [#allocation9], 4096  }
 0x108   : > { %2004 = vsyncadd (%p2663_p1), [#allocation9], 4294963200  ;;  %p2664_p13 = pmov %p2663_p1 }
 0x109   : > { %p2665_p0 = pmov %p2663_p1 }
 0x10a   : > { %2006 = dma.done.wait (%p2664_p13), [#allocation12], 4096  }
 0x10b   : > { %2008 = vsyncadd (%p2665_p0), [#allocation12], 4294963200  ;;  %p2666_p6 = pmov %p2665_p0 }
 0x10c   : > { %p2667_p2 = pmov %p2665_p0 }
 0x10d   : > { %2010 = dma.done.wait (%p2666_p6), [#allocation15], 2048  }
 0x10e   : > { %2012 = vsyncadd (%p2667_p2), [#allocation15], 4294965248  ;;  %v2043_v0 = vmov 0.0   ;;  %vm2044_vm0 = vmmov 0   ;;  %v616_v1 = vld [vmem:[%s539_s20] sm:$0xff]  ;;  %v617_v2 = vld [vmem:[%s539_s20 + $0x8] sm:$0xff] }
 0x10f   : > { %1471 = vmatprep.subr.bf16.mxu0 %v2043_v0  ;;  %1473 = vmatprep.mubr.msk.bf16.mxu0 %vm2044_vm0, %v2043_v0  ;;  %v613_v3 = vld [vmem:[%s530_s8] sm:$0xff]  ;;  %v621_v4 = vpack.c.bf16 %v617_v2, %v616_v1  ;;  %v614_v5 = vld [vmem:[%s530_s8 + $0x8] sm:$0xff]  ;;  %vm622_vm1 = vcmask 130048   ;;  %s2668_s13 = sld [smem:[#allocation27_spill]]  ;;  %s2669_s6 = sld [smem:[#allocation29_spill]] }
 0x110   : > { %1477 = vmatprep.subr.bf16.mxu1 %v2043_v0  ;;  %1479 = vmatprep.mubr.msk.bf16.mxu1 %vm2044_vm0, %v2043_v0  ;;  %v2472_v6 = vpack.c.bf16 %v614_v5, %v613_v3  ;;  %v618_v7 = vld [vmem:[#allocation7] sm:$0xff]  ;;  %v619_v8 = vld [vmem:[#allocation7 + $0x8] sm:$0xff]  ;;  %v723_v10 = vld [vmem:[#allocation8] sm:$0xff]  ;;  %s2670_s0 = sld [smem:[#allocation31_spill]]  ;;  %s2671_s8 = sld [smem:[#allocation32_spill]] }
 0x111   : > { %1472 = vmatpush3.bf16.msra.mxu0 %v621_v4  ;;  %v620_v9 = vpack.c.bf16 %v619_v8, %v618_v7  ;;  %v724_v11 = vld [vmem:[#allocation8 + $0x8] sm:$0xff]  ;;  %v725_v12 = vld [vmem:[#allocation8 + $0x10] sm:$0xff]  ;;  %v726_v14 = vld [vmem:[#allocation8 + $0x18] sm:$0xff]  ;;  %s2672_s20 = sld [smem:[#allocation33_spill]]  ;;  %s1411_s5 = sshll.u32 %s2142_s19, 4 }
 0x112   : > { %1483 = vmatprep.subr.bf16.mxu0 %v2043_v0  ;;  %v739_v13 = vpack.c.bf16 %v724_v11, %v723_v10  ;;  %v740_v15 = vpack.c.bf16 %v726_v14, %v725_v12  ;;  %v727_v16 = vld [vmem:[#allocation8 + $0x20] sm:$0xff]  ;;  %v728_v17 = vld [vmem:[#allocation8 + $0x28] sm:$0xff]  ;;  %v729_v19 = vld [vmem:[#allocation8 + $0x30] sm:$0xff]  ;;  %s611_s27 = scalar_lea.vmem [#allocation16], %s2437_s26  ;;  %s2673_s14 = sld [smem:[#allocation34_spill]] }
 0x113   : > { %1478 = vmatpush3.bf16.msra.mxu1 %v620_v9  ;;  %v741_v18 = vpack.c.bf16 %v728_v17, %v727_v16  ;;  %v730_v20 = vld [vmem:[#allocation8 + $0x38] sm:$0xff]  ;;  %v731_v22 = vld [vmem:[#allocation8 + $0x40] sm:$0xff]  ;;  %v732_v23 = vld [vmem:[#allocation8 + $0x48] sm:$0xff]  ;;  %s1232_s23 = sshll.u32 %s611_s27, 4  ;;  %p2674_p10 = scmp.ne.s32.totalorder %s2653_s17, 0  ;;  %s2567_s23 = int_to_ptr.vmem [resolvable:$true] %s1232_s23 }
 0x114   : > { %1474 = vmatmul.mubr.msk.bf16.vlgmr.msra.gmra.mrb[0].mxu0 %vm622_vm1, %v2472_v6  ;;  %1503 = vmatprep.subr.bf16.mxu1 %v2043_v0  ;;  %v742_v21 = vpack.c.bf16 %v730_v20, %v729_v19  ;;  %v743_v24 = vpack.c.bf16 %v732_v23, %v731_v22  ;;  %v733_v25 = vld [vmem:[#allocation8 + $0x50] sm:$0xff]  ;;  %v734_v26 = vld [vmem:[#allocation8 + $0x58] sm:$0xff]  ;;  %v735_v33 = vld [vmem:[#allocation8 + $0x60] sm:$0xff]  ;;  %s1945_s19 = scalar_lea.vmem %s2567_s23, 16  ;;  %s2045_s9 = smov [#allocation16]  }
 0x115   : > { %1499 = vmatprep.mubr.msk.bf16.mxu0 %vm2044_vm0, %v2043_v0  ;;  %1484 = vmatpush3.bf16.msra.mxu0 %v739_v13  ;;  %v744_v27 = vpack.c.bf16 %v734_v26, %v733_v25  ;;  %v736_v34 = vld [vmem:[#allocation8 + $0x68] sm:$0xff]  ;;  %v737_v36 = vld [vmem:[#allocation8 + $0x70] sm:$0xff]  ;;  %v738_v37 = vld [vmem:[#allocation8 + $0x78] sm:$0xff]  ;;  %p1946_p4 = scmp.ne.s32.totalorder %s2567_s23, %s1945_s19  ;;  %s1949_s25 = sshll.u32 %s2045_s9, 4  ;;  %s1950_s25 = int_to_ptr.vmem [resolvable:$false] %s1949_s25 }
 0x116   : > { %1485 = vmatprep.subr.bf16.mxu0 %v2043_v0  ;;  %v745_v35 = vpack.c.bf16 %v736_v34, %v735_v33  ;;  %v746_v38 = vpack.c.bf16 %v738_v37, %v737_v36  ;;  %v1404_v39 = vld [vmem:[%s2612_s3] ss:$0 sm:$0xff]  ;;  %v842_v52 = vld [vmem:[#allocation10] sm:$0xff]  ;;  %v843_v53 = vld [vmem:[#allocation10 + $0x8] sm:$0xff]  ;;  %p1952_p9 = scmp.lt.s32.totalorder %s2567_s23, %s1950_s25 }
 0x117   : > { %v858_v56 = vpack.c.bf16 %v843_v53, %v842_v52  ;;  %v844_v57 = vld [vmem:[#allocation10 + $0x10] sm:$0xff]  ;;  %v845_v58 = vld [vmem:[#allocation10 + $0x18] sm:$0xff]  ;;  %v846_v60 = vld [vmem:[#allocation10 + $0x20] sm:$0xff]  ;;  %p1947_p5 = pnand %p1946_p4, %p2674_p10 }
 0x118   : > { %v859_v59 = vpack.c.bf16 %v845_v58, %v844_v57  ;;  %v847_v61 = vld [vmem:[#allocation10 + $0x28] sm:$0xff]  ;;  %v848_v63 = vld [vmem:[#allocation10 + $0x30] sm:$0xff]  ;;  %v849_v1 = vld [vmem:[#allocation10 + $0x38] sm:$0xff]  ;;  %s2565_s18 = scalar_lea.hbm %s2673_s14, %s1411_s5 }
 0x119   : > { %1486 = vmatpush3.bf16.msra.mxu0 %v740_v15  ;;  %v860_v62 = vpack.c.bf16 %v847_v61, %v846_v60  ;;  %v861_v2 = vpack.c.bf16 %v849_v1, %v848_v63  ;;  %v850_v3 = vld [vmem:[#allocation10 + $0x40] sm:$0xff]  ;;  %v851_v4 = vld [vmem:[#allocation10 + $0x48] sm:$0xff]  ;;  %v852_v7 = vld [vmem:[#allocation10 + $0x50] sm:$0xff]  ;;  %p1948_p7 = pneg %p1947_p5 }
 0x11a   : > { %1487 = vmatprep.subr.bf16.mxu0 %v2043_v0  ;;  %v862_v5 = vpack.c.bf16 %v851_v4, %v850_v3  ;;  %v853_v8 = vld [vmem:[#allocation10 + $0x58] sm:$0xff]  ;;  %v854_v10 = vld [vmem:[#allocation10 + $0x60] sm:$0xff]  ;;  %v855_v11 = vld [vmem:[#allocation10 + $0x68] sm:$0xff] }
 0x11b   : > { %v863_v9 = vpack.c.bf16 %v853_v8, %v852_v7  ;;  %v864_v12 = vpack.c.bf16 %v855_v11, %v854_v10  ;;  %v856_v13 = vld [vmem:[#allocation10 + $0x70] sm:$0xff]  ;;  %v857_v14 = vld [vmem:[#allocation10 + $0x78] sm:$0xff]  ;;  %v961_v26 = vld [vmem:[#allocation11] sm:$0xff] }
 0x11c   : > { %v865_v15 = vpack.c.bf16 %v857_v14, %v856_v13  ;;  %v1406_v16 = vld [vmem:[%s2668_s13] ss:$0 sm:$0xff]  ;;  %v966_v33 = vld [vmem:[#allocation11 + $0x28] sm:$0xff]  ;;  %v968_v36 = vld [vmem:[#allocation11 + $0x38] sm:$0xff] }
 0x11d   : > { %1488 = vmatpush3.bf16.msra.mxu0 %v741_v18  ;;  %v975_v52 = vld [vmem:[#allocation11 + $0x70] sm:$0xff]  ;;  %v976_v53 = vld [vmem:[#allocation11 + $0x78] sm:$0xff]  ;;  %v1087_v7 = vld [vmem:[#allocation13 + $0x8] sm:$0xff] }
 0x11e   : > { %1489 = vmatprep.subr.bf16.mxu0 %v2043_v0  ;;  %v1088_v11 = vld [vmem:[#allocation13 + $0x10] sm:$0xff]  ;;  %v1090_v14 = vld [vmem:[#allocation13 + $0x20] sm:$0xff] }
 0x121   : > { %1490 = vmatpush3.bf16.msra.mxu0 %v742_v21 }
 0x122   : > { %1491 = vmatprep.subr.bf16.mxu0 %v2043_v0 }
 0x125   : > { %1492 = vmatpush3.bf16.msra.mxu0 %v743_v24 }
 0x126   : > { %1493 = vmatprep.subr.bf16.mxu0 %v2043_v0 }
 0x129   : > { %1494 = vmatpush3.bf16.msra.mxu0 %v744_v27  ;;  %v962_v27 = vld [vmem:[#allocation11 + $0x8] sm:$0xff] }
 0x12a   : > { %1495 = vmatprep.subr.bf16.mxu0 %v2043_v0 }
 0x12d   : > { %1496 = vmatpush3.bf16.msra.mxu0 %v745_v35  ;;  %v967_v35 = vld [vmem:[#allocation11 + $0x30] sm:$0xff] }
 0x12e   : > { %1497 = vmatprep.subr.bf16.mxu0 %v2043_v0  ;;  %v980_v37 = vpack.c.bf16 %v968_v36, %v967_v35  ;;  %v1156_v35 = vld [vmem:[#allocation14 + $0x18] sm:$0xff] }
 0x131   : > { %1498 = vmatpush3.bf16.msra.mxu0 %v746_v38  ;;  %v969_v38 = vld [vmem:[#allocation11 + $0x40] sm:$0xff] }
 0x132   : > { %1535 = vmatprep.subr.bf16.mxu0 %v2043_v0 }
 0x1e7   : > { %v660_v28 = vpop.f32.mrb[0].mxu0 }
 0x1e8   : > { %v1475_v29 = vpop.f32.mrb[1].mxu0 }
 0x1e9   : > { %v663_v30 = vpop.f32.mrb[2].mxu0  ;;  %v977_v29 = vpack.c.bf16 %v962_v27, %v961_v26  ;;  %v1099_v26 = vld [vmem:[#allocation13 + $0x68] sm:$0xff] }
 0x1ea   : > { %v667_v31 = vpack.c.bf16 %v663_v30, %v660_v28  ;;  %v1476_v32 = vpop.f32.mrb[3].mxu0  ;;  %v963_v28 = vld [vmem:[#allocation11 + $0x10] sm:$0xff]  ;;  %v964_v30 = vld [vmem:[#allocation11 + $0x18] sm:$0xff] }
 0x1eb   : > { %v965_v32 = vld [vmem:[#allocation11 + $0x20] sm:$0xff] }
 0x1ec   : > { %1480 = vmatmul.mubr.msk.bf16.vlgmr.msra.gmra.mrb[0].mxu1 %vm622_vm1, %v667_v31  ;;  %v978_v31 = vpack.c.bf16 %v964_v30, %v963_v28  ;;  %v979_v34 = vpack.c.bf16 %v966_v33, %v965_v32  ;;  %v1100_v28 = vld [vmem:[#allocation13 + $0x70] sm:$0xff]  ;;  %v1154_v32 = vld [vmem:[#allocation14 + $0x8] sm:$0xff] }
 0x1ed   : > { %1505 = vmatprep.mubr.msk.bf16.mxu1 %vm2044_vm0, %v2043_v0  ;;  %v1155_v33 = vld [vmem:[#allocation14 + $0x10] sm:$0xff] }
 0x1ee   : > { %v1170_v36 = vpack.c.bf16 %v1156_v35, %v1155_v33 }
 0x2bf   : > { %v705_v40 = vpop.f32.mrb[0].mxu1 }
 0x2c0   : > { %v719_v41 = vadd.f32 %v1404_v39, %v705_v40  ;;  %v1481_v42 = vpop.f32.mrb[1].mxu1 }
 0x2c1   : > { %v708_v43 = vpop.f32.mrb[2].mxu1  ;;  %v972_v42 = vld [vmem:[#allocation11 + $0x58] sm:$0xff] }
 0x2c2   : > { %v720_v44 = vadd.f32 %v1404_v39, %v708_v43  ;;  %v1482_v45 = vpop.f32.mrb[3].mxu1  ;;  %v721_v46 = vmax.f32 %v719_v41, 0.0  ;;  %v970_v39 = vld [vmem:[#allocation11 + $0x48] sm:$0xff]  ;;  %v971_v41 = vld [vmem:[#allocation11 + $0x50] sm:$0xff] }
 0x2c3   : > { %v981_v40 = vpack.c.bf16 %v970_v39, %v969_v38  ;;  %v982_v43 = vpack.c.bf16 %v972_v42, %v971_v41  ;;  %v1158_v38 = vld [vmem:[#allocation14 + $0x28] sm:$0xff]  ;;  %v1160_v41 = vld [vmem:[#allocation14 + $0x38] sm:$0xff] }
 0x2c4   : > { %v722_v47 = vmax.f32 %v720_v44, 0.0 }
 0x2c6   : > { %v747_v48 = vpack.c.bf16 %v722_v47, %v721_v46 }
 0x2c8   : > { %1500 = vmatmul.mubr.bf16.vlgmr.msra.gmra.mrb[4].mxu0 %v747_v48 }
 0x2c9   : > { %1551 = vmatprep.mubr.msk.bf16.mxu0 %vm2044_vm0, %v2043_v0  ;;  %1536 = vmatpush3.bf16.msra.mxu0 %v977_v29  ;;  %v1101_v29 = vld [vmem:[#allocation13 + $0x78] sm:$0xff] }
 0x2ca   : > { %1537 = vmatprep.subr.bf16.mxu0 %v2043_v0  ;;  %v1109_v30 = vpack.c.bf16 %v1101_v29, %v1100_v28 }
 0x2cd   : > { %1538 = vmatpush3.bf16.msra.mxu0 %v978_v31  ;;  %v1153_v31 = vld [vmem:[#allocation14] sm:$0xff] }
 0x2ce   : > { %1539 = vmatprep.subr.bf16.mxu0 %v2043_v0 }
 0x2d1   : > { %1540 = vmatpush3.bf16.msra.mxu0 %v979_v34  ;;  %v1169_v34 = vpack.c.bf16 %v1154_v32, %v1153_v31 }
 0x2d2   : > { %1541 = vmatprep.subr.bf16.mxu0 %v2043_v0 }
 0x2d5   : > { %1542 = vmatpush3.bf16.msra.mxu0 %v980_v37  ;;  %v1157_v37 = vld [vmem:[#allocation14 + $0x20] sm:$0xff] }
 0x2d6   : > { %1543 = vmatprep.subr.bf16.mxu0 %v2043_v0  ;;  %v1171_v39 = vpack.c.bf16 %v1158_v38, %v1157_v37 }
 0x2d9   : > { %1544 = vmatpush3.bf16.msra.mxu0 %v981_v40  ;;  %v1159_v40 = vld [vmem:[#allocation14 + $0x30] sm:$0xff] }
 0x2da   : > { %1545 = vmatprep.subr.bf16.mxu0 %v2043_v0  ;;  %v1172_v42 = vpack.c.bf16 %v1160_v41, %v1159_v40 }
 0x2dd   : > { %1546 = vmatpush3.bf16.msra.mxu0 %v982_v43  ;;  %v1161_v43 = vld [vmem:[#allocation14 + $0x40] sm:$0xff] }
 0x2de   : > { %1547 = vmatprep.subr.bf16.mxu0 %v2043_v0 }
 0x39b   : > { %v782_v49 = vpop.f32.mrb[4].mxu0 }
 0x39c   : > { %v1501_v50 = vpop.f32.mrb[5].mxu0 }
 0x39d   : > { %v785_v51 = vpop.f32.mrb[6].mxu0  ;;  %v974_v50 = vld [vmem:[#allocation11 + $0x68] sm:$0xff] }
 0x39e   : > { %v789_v54 = vpack.c.bf16 %v785_v51, %v782_v49  ;;  %v1502_v55 = vpop.f32.mrb[7].mxu0  ;;  %v973_v49 = vld [vmem:[#allocation11 + $0x60] sm:$0xff] }
 0x39f   : > { %v983_v51 = vpack.c.bf16 %v974_v50, %v973_v49  ;;  %v1408_v55 = vld [vmem:[%s2669_s6] ss:$0 sm:$0xff]  ;;  %s1220_s6 = scalar_lea.sflag [#allocation4], %s2437_s26 }
 0x3a0   : > { %1504 = vmatpush3.bf16.msra.mxu1 %v789_v54  ;;  %v984_v54 = vpack.c.bf16 %v976_v53, %v975_v52  ;;  %v1410_v50 = vld [vmem:[%s2670_s0] ss:$0 sm:$0xff]  ;;  %s1951_s0 = scalar_lea.vmem %s1950_s25, 32 }
 0x3a1   : > { %1509 = vmatprep.subr.bf16.mxu1 %v2043_v0  ;;  %1548 = vmatpush3.bf16.msra.mxu0 %v983_v51  ;;  %p1953_p8 = scmp.lt.s32.totalorder %s1951_s0, %s1945_s19 }
 0x3a2   : > { %1549 = vmatprep.subr.bf16.mxu0 %v2043_v0 }
 0x3a3   : > { %1506 = vmatmul.mubr.msk.bf16.vlgmr.msra.gmra.mrb[4].mxu1 %vm622_vm1, %v2472_v6  ;;  %p1954_p11 = por %p1953_p8, %p1952_p9 }
 0x3a4   : > { %1510 = vmatpush3.bf16.msra.mxu1 %v858_v56  ;;  %1525 = vmatprep.mubr.msk.bf16.mxu1 %vm2044_vm0, %v2043_v0 }
 0x3a5   : > { %1511 = vmatprep.subr.bf16.mxu1 %v2043_v0  ;;  %1550 = vmatpush3.bf16.msra.mxu0 %v984_v54  ;;  %p1955_p3 = pnand %p1954_p11, %p1948_p7 }
 0x3a6   : > { %1581 = vmatprep.subr.bf16.mxu0 %v2043_v0 }
 0x3a8   : > { %1512 = vmatpush3.bf16.msra.mxu1 %v859_v59 }
 0x3a9   : > { %1513 = vmatprep.subr.bf16.mxu1 %v2043_v0 }
 0x3ac   : > { %1514 = vmatpush3.bf16.msra.mxu1 %v860_v62 }
 0x3ad   : > { %1515 = vmatprep.subr.bf16.mxu1 %v2043_v0 }
 0x3b0   : > { %1516 = vmatpush3.bf16.msra.mxu1 %v861_v2 }
 0x3b1   : > { %1517 = vmatprep.subr.bf16.mxu1 %v2043_v0 }
 0x3b4   : > { %1518 = vmatpush3.bf16.msra.mxu1 %v862_v5  ;;  %v1086_v5 = vld [vmem:[#allocation13] sm:$0xff] }
 0x3b5   : > { %1519 = vmatprep.subr.bf16.mxu1 %v2043_v0  ;;  %v1102_v10 = vpack.c.bf16 %v1087_v7, %v1086_v5  ;;  %v1168_v5 = vld [vmem:[#allocation14 + $0x78] sm:$0xff] }
 0x3b8   : > { %1520 = vmatpush3.bf16.msra.mxu1 %v863_v9 }
 0x3b9   : > { %1521 = vmatprep.subr.bf16.mxu1 %v2043_v0 }
 0x3bc   : > { %1522 = vmatpush3.bf16.msra.mxu1 %v864_v12  ;;  %v1089_v12 = vld [vmem:[#allocation13 + $0x18] sm:$0xff] }
 0x3bd   : > { %1523 = vmatprep.subr.bf16.mxu1 %v2043_v0  ;;  %v1103_v13 = vpack.c.bf16 %v1089_v12, %v1088_v11 }
 0x3c0   : > { %1524 = vmatpush3.bf16.msra.mxu1 %v865_v15  ;;  %v1091_v15 = vld [vmem:[#allocation13 + $0x28] sm:$0xff] }
 0x3c1   : > { %1529 = vmatprep.subr.bf16.mxu1 %v2043_v0 }
 0x476   : > { %v824_v17 = vpop.f32.mrb[4].mxu1 }
 0x477   : > { %v838_v18 = vadd.f32 %v1406_v16, %v824_v17  ;;  %v1507_v19 = vpop.f32.mrb[5].mxu1  ;;  %v1092_v17 = vld [vmem:[#allocation13 + $0x30] sm:$0xff] }
 0x478   : > { %v827_v20 = vpop.f32.mrb[6].mxu1 }
 0x479   : > { %v839_v21 = vadd.f32 %v1406_v16, %v827_v20  ;;  %v1508_v22 = vpop.f32.mrb[7].mxu1  ;;  %v840_v23 = vmax.f32 %v838_v18, 0.0  ;;  %v1104_v16 = vpack.c.bf16 %v1091_v15, %v1090_v14  ;;  %v1093_v18 = vld [vmem:[#allocation13 + $0x38] sm:$0xff]  ;;  %v1095_v20 = vld [vmem:[#allocation13 + $0x48] sm:$0xff] }
 0x47a   : > { %v1105_v19 = vpack.c.bf16 %v1093_v18, %v1092_v17  ;;  %v1096_v22 = vld [vmem:[#allocation13 + $0x50] sm:$0xff] }
 0x47b   : > { %v841_v24 = vmax.f32 %v839_v21, 0.0 }
 0x47d   : > { %v866_v25 = vpack.c.bf16 %v841_v24, %v840_v23  ;;  %v1097_v23 = vld [vmem:[#allocation13 + $0x58] sm:$0xff] }
 0x47e   : > { %v1107_v24 = vpack.c.bf16 %v1097_v23, %v1096_v22 }
 0x47f   : > { %1526 = vmatmul.mubr.bf16.vlgmr.msra.gmra.mrb[8].mxu1 %v866_v25  ;;  %v1098_v25 = vld [vmem:[#allocation13 + $0x60] sm:$0xff] }
 0x480   : > { %1531 = vmatprep.mubr.msk.bf16.mxu1 %vm2044_vm0, %v2043_v0  ;;  %v1108_v27 = vpack.c.bf16 %v1099_v26, %v1098_v25 }
 0x552   : > { %v901_v44 = vpop.f32.mrb[8].mxu1 }
 0x553   : > { %v1527_v45 = vpop.f32.mrb[9].mxu1 }
 0x554   : > { %v904_v46 = vpop.f32.mrb[10].mxu1 }
 0x555   : > { %v908_v47 = vpack.c.bf16 %v904_v46, %v901_v44  ;;  %v1528_v48 = vpop.f32.mrb[11].mxu1  ;;  %v1162_v44 = vld [vmem:[#allocation14 + $0x48] sm:$0xff]  ;;  %v1163_v46 = vld [vmem:[#allocation14 + $0x50] sm:$0xff] }
 0x556   : > { %v1173_v45 = vpack.c.bf16 %v1162_v44, %v1161_v43 }
 0x557   : > { %1530 = vmatpush3.bf16.msra.mxu1 %v908_v47  ;;  %v1164_v47 = vld [vmem:[#allocation14 + $0x58] sm:$0xff] }
 0x558   : > { %1555 = vmatprep.subr.bf16.mxu1 %v2043_v0  ;;  %v1174_v48 = vpack.c.bf16 %v1164_v47, %v1163_v46 }
 0x55a   : > { %1532 = vmatmul.mubr.msk.bf16.vlgmr.msra.gmra.mrb[12].mxu1 %vm622_vm1, %v2472_v6 }
 0x55b   : > { %1557 = vmatprep.mubr.msk.bf16.mxu1 %vm2044_vm0, %v2043_v0 }
 0x62d   : > { %v943_v56 = vpop.f32.mrb[12].mxu1 }
 0x62e   : > { %v957_v57 = vadd.f32 %v1408_v55, %v943_v56  ;;  %v1533_v58 = vpop.f32.mrb[13].mxu1 }
 0x62f   : > { %v946_v59 = vpop.f32.mrb[14].mxu1 }
 0x630   : > { %v958_v60 = vadd.f32 %v1408_v55, %v946_v59  ;;  %v1534_v61 = vpop.f32.mrb[15].mxu1  ;;  %v959_v62 = vmax.f32 %v957_v57, 0.0 }
 0x632   : > { %v960_v63 = vmax.f32 %v958_v60, 0.0 }
 0x634   : > { %v985_v1 = vpack.c.bf16 %v960_v63, %v959_v62 }
 0x636   : > { %1552 = vmatmul.mubr.bf16.vlgmr.msra.gmra.mrb[8].mxu0 %v985_v1  ;;  %v1165_v1 = vld [vmem:[#allocation14 + $0x60] sm:$0xff] }
 0x637   : > { %1597 = vmatprep.mubr.msk.bf16.mxu0 %vm2044_vm0, %v2043_v0  ;;  %1582 = vmatpush3.bf16.msra.mxu0 %v1169_v34 }
 0x638   : > { %1583 = vmatprep.subr.bf16.mxu0 %v2043_v0 }
 0x63b   : > { %1584 = vmatpush3.bf16.msra.mxu0 %v1170_v36 }
 0x63c   : > { %1585 = vmatprep.subr.bf16.mxu0 %v2043_v0 }
 0x63f   : > { %1586 = vmatpush3.bf16.msra.mxu0 %v1171_v39 }
 0x640   : > { %1587 = vmatprep.subr.bf16.mxu0 %v2043_v0 }
 0x643   : > { %1588 = vmatpush3.bf16.msra.mxu0 %v1172_v42 }
 0x644   : > { %1589 = vmatprep.subr.bf16.mxu0 %v2043_v0 }
 0x647   : > { %1590 = vmatpush3.bf16.msra.mxu0 %v1173_v45 }
 0x648   : > { %1591 = vmatprep.subr.bf16.mxu0 %v2043_v0 }
 0x64b   : > { %1592 = vmatpush3.bf16.msra.mxu0 %v1174_v48 }
 0x64c   : > { %1593 = vmatprep.subr.bf16.mxu0 %v2043_v0 }
 0x709   : > { %v1020_v2 = vpop.f32.mrb[8].mxu0 }
 0x70a   : > { %v1553_v3 = vpop.f32.mrb[9].mxu0 }
 0x70b   : > { %v1023_v4 = vpop.f32.mrb[10].mxu0 }
 0x70c   : > { %v1027_v8 = vpack.c.bf16 %v1023_v4, %v1020_v2  ;;  %v1554_v9 = vpop.f32.mrb[11].mxu0  ;;  %v1166_v2 = vld [vmem:[#allocation14 + $0x68] sm:$0xff]  ;;  %v1167_v4 = vld [vmem:[#allocation14 + $0x70] sm:$0xff] }
 0x70d   : > { %v1175_v3 = vpack.c.bf16 %v1166_v2, %v1165_v1  ;;  %v1176_v7 = vpack.c.bf16 %v1168_v5, %v1167_v4 }
 0x70e   : > { %1556 = vmatpush3.bf16.msra.mxu1 %v1027_v8  ;;  %v1110_v8 = vld [vmem:[%s2671_s8] sm:$0x1] }
 0x70f   : > { %1561 = vmatprep.subr.bf16.mxu1 %v2043_v0  ;;  %1594 = vmatpush3.bf16.msra.mxu0 %v1175_v3 }
 0x710   : > { %1595 = vmatprep.subr.bf16.mxu0 %v2043_v0 }
 0x711   : > { %1558 = vmatmul.mubr.msk.bf16.vlgmr.msra.gmra.mrb[16].mxu1 %vm622_vm1, %v2472_v6  ;;  %v1094_v6 = vld [vmem:[#allocation13 + $0x40] sm:$0xff] }
 0x712   : > { %1562 = vmatpush3.bf16.msra.mxu1 %v1102_v10  ;;  %1577 = vmatprep.mubr.msk.bf16.mxu1 %vm2044_vm0, %v2043_v0  ;;  %v1106_v21 = vpack.c.bf16 %v1095_v20, %v1094_v6 }
 0x713   : > { %1563 = vmatprep.subr.bf16.mxu1 %v2043_v0  ;;  %1596 = vmatpush3.bf16.msra.mxu0 %v1176_v7 }
 0x716   : > { %1564 = vmatpush3.bf16.msra.mxu1 %v1103_v13 }
 0x717   : > { %1565 = vmatprep.subr.bf16.mxu1 %v2043_v0 }
 0x71a   : > { %1566 = vmatpush3.bf16.msra.mxu1 %v1104_v16 }
 0x71b   : > { %1567 = vmatprep.subr.bf16.mxu1 %v2043_v0 }
 0x71e   : > { %1568 = vmatpush3.bf16.msra.mxu1 %v1105_v19 }
 0x71f   : > { %1569 = vmatprep.subr.bf16.mxu1 %v2043_v0 }
 0x722   : > { %1570 = vmatpush3.bf16.msra.mxu1 %v1106_v21 }
 0x723   : > { %1571 = vmatprep.subr.bf16.mxu1 %v2043_v0 }
 0x726   : > { %1572 = vmatpush3.bf16.msra.mxu1 %v1107_v24 }
 0x727   : > { %1573 = vmatprep.subr.bf16.mxu1 %v2043_v0 }
 0x72a   : > { %1574 = vmatpush3.bf16.msra.mxu1 %v1108_v27 }
 0x72b   : > { %1575 = vmatprep.subr.bf16.mxu1 %v2043_v0  ;;  %v1177_v0 = vld [vmem:[%s2672_s20] sm:$0x1] }
 0x72e   : > { %1576 = vmatpush3.bf16.msra.mxu1 %v1109_v30 }
 0x7e4   : > { %v1062_v49 = vpop.f32.mrb[16].mxu1 }
 0x7e5   : > { %v1559_v51 = vpop.f32.mrb[17].mxu1  ;;  %v1076_v53 = vadd.f32 %v1410_v50, %v1062_v49 }
 0x7e6   : > { %v1065_v52 = vpop.f32.mrb[18].mxu1 }
 0x7e7   : > { %v1077_v54 = vadd.f32 %v1410_v50, %v1065_v52  ;;  %v1560_v55 = vpop.f32.mrb[19].mxu1 }
 0x7e9   : > { %v1078_v56 = vadd.f32 %v1077_v54, %v1076_v53 }
 0x7eb   : > { %v1079_v57 = vrot.slane %v1078_v56, 4 }
 0x7ed   : > { %v1080_v58 = vadd.f32 %v1079_v57, %v1078_v56 }
 0x7ef   : > { %v1081_v59 = vrot.slane %v1080_v58, 2 }
 0x7f1   : > { %v1082_v60 = vadd.f32 %v1081_v59, %v1080_v58 }
 0x7f3   : > { %v1083_v61 = vrot.slane %v1082_v60, 1 }
 0x7f5   : > { %v1084_v62 = vadd.f32 %v1083_v61, %v1082_v60 }
 0x7f7   : > { %v1085_v63 = vpack.c.bf16 %v1084_v62, %v1084_v62 }
 0x7f9   : > { %1578 = vmatmul.mubr.bf16.vlgmr.msra.gmra.mrb[20].mxu1 %v1085_v63 }
 0x8cc   : > { %v1145_v9 = vpop.f32.mrb[20].mxu1 }
 0x8cd   : > { %v1146_v10 = vadd.f32 %v1145_v9, %v1110_v8  ;;  %v1579_v11 = vpop.f32.mrb[21].mxu1 }
 0x8ce   : > { %v1148_v12 = vpop.f32.mrb[22].mxu1 }
 0x8cf   : > { %v1151_v13 = vmax.f32 %v1146_v10, 0.0  ;;  %v1580_v14 = vpop.f32.mrb[23].mxu1 }
 0x8d1   : > { %v1152_v15 = vpack.c.bf16 %v1151_v13, %v1151_v13 }
 0x8d3   : > { %1598 = vmatmul.mubr.bf16.vlgmr.msra.gmra.mrb[12].mxu0 %v1152_v15 }
 0x9a6   : > { %v1212_v16 = vpop.f32.mrb[12].mxu0 }
 0x9a7   : > { %v1213_v17 = vadd.f32 %v1212_v16, %v1177_v0  ;;  %v1599_v18 = vpop.f32.mrb[13].mxu0 }
 0x9a8   : > { %v1215_v19 = vpop.f32.mrb[14].mxu0 }
 0x9a9   : > { %1218 = vst [vmem:[%s611_s27] sm:$0x1] %v1213_v17  ;;  %v1600_v6 = vpop.f32.mrb[15].mxu0 }
 0x9aa   : > { %1958 = shalt.err (!%p1955_p3)
}
 0x9ab   : > { %s1959_s26 = scalar_lea.hbm %s2565_s18, 16  ;;  %s1963_s8 = scalar_lea.hbm %s2673_s14, 32 }
 0x9ac   : > { %p1960_p12 = scmp.ne.s32.totalorder %s2565_s18, %s1959_s26  ;;  %p1964_p0 = scmp.lt.u32.totalorder %s2565_s18, %s2673_s14 }
 0x9ad   : > { %p1965_p6 = scmp.lt.u32.totalorder %s1963_s8, %s1959_s26  ;;  %p1967_p4 = scmp.lt.u32.totalorder %s1959_s26, %s2565_s18 }
 0x9ae   : > { %p1961_p1 = pnand %p1960_p12, %p2674_p10 }
 0x9af   : > { %p1966_p2 = por %p1965_p6, %p1964_p0 }
 0x9b0   : > { %p1962_p13 = pneg %p1961_p1 }
 0x9b1   : > { %p1968_p5 = por %p1967_p4, %p1966_p2 }
 0x9b3   : > { %p1969_p7 = pnand %p1968_p5, %p1962_p13 }
 0x9b5   : > { %1972 = shalt.err (!%p1969_p7)
}
 0x9b6   : > { %1629 = dma.vmem_to_hbm [thread:$0]  (%p2674_p10), %s2567_s23, 16, %s2565_s18, %s1220_s6  }
 0x9b7 PF: > { %s1244_s20 = sand.u32 1, %s2019_s29   ;;  %p2675_p9 = scmp.ne.s32.totalorder %s2654_s24, 0 }
 0x9b8   : > { %p2676_p8 = scmp.ge.s32.totalorder %s2031_s16, 2  ;;  %s1245_s5 = scalar_lea.sflag [#allocation4], %s1244_s20 }
 0x9ba   : > { %p1658_p11 = pnand %p2676_p8, %p2675_p9 }
 0x9bc   : > { %2014 = dma.done.wait (!%p1658_p11), %s1245_s5, 16  }
 0x9bd   : > { %2016 = vsyncadd (!%p1658_p11), %s1245_s5, 4294967280  ;;  %p33_p3 = scmp.ge.s32.totalorder %s2315_s21, 4   ;;  %s2677_s29 = smov %s2023_s30 }
 0x9be   : > { %s2678_s30 = smov %s2027_s15  ;;  %s2679_s15 = smov %s2326_s7 }
 0x9bf   : > { %s2680_s16 = smov %s2315_s21  ;;  %35 = sbr.rel (!%p33_p3) target bundleno = 22 (0x16), region = 158 }
 0x9c6   :  { %1249 = vsyncpa [#allocation3], 1 }
 0x9c7   :  { %1251 = vsyncpa [#allocation3 + $0x1], 1 }
 0x9c8   :  { %1252 = vsyncpa [#allocation6], 1 }
 0x9c9   :  { %1254 = vsyncpa [#allocation6 + $0x1], 1 }
 0x9ca   :  { %1255 = vsyncpa [#allocation9], 1 }
 0x9cb   :  { %1256 = vsyncpa [#allocation12], 1 }
 0x9cc   :  { %1257 = vsyncpa [#allocation15], 1 }
 0x9cd   :  { %1258 = vsyncpa [#allocation4], 1 }
 0x9ce   :  { %1260 = vsyncpa [#allocation4 + $0x1], 1 }

</bundles_post_ra>
